<compile_context>
chip_gen: v5e
topology: v5e:2x2
jax: 0.10.0
libtpu: 0.0.40
codegen_flags: <defaults>
</compile_context>

<pallas_src>
import functools
import math

import jax
import jax.numpy as jnp
import numpy as np
from jax import lax
from jax.experimental import pallas as pl
from jax.experimental.pallas import tpu as pltpu

GAMMA = 2.0          # focal loss gamma (hard-coded to 2 in the module, via om*om)
ALPHA = 0.25         # focal loss alpha
IOU_EPS = 1e-6       # eps used by the plain midpoint IoU
CIOU_EPS = 1e-7      # eps used by the CIoU branch
NUM_CLASSES = 7

LANE = 128           # TPU lane width
PRED_PAD = -100.0    # padded conf logit -> focal term is exactly 0 (no validity mask needed)


@functools.lru_cache(maxsize=None)
def _tpu_cores_and_vmem():
    """(tensorcores per chip, VMEM bytes), with safe fallbacks (1 core, 64 MiB)."""
    cores, vmem = 1, 64 * 1024 * 1024
    try:
        kind = jax.devices()[0].device_kind.lower()
    except Exception:
        kind = ""
    # 2 TensorCores per chip on v7x (and v4/v5p megacore); 1 on v5e/v6e.
    if ("v7" in kind) or ("v4" in kind) or ("v5p" in kind):
        cores = 2
    try:
        info = pltpu.get_tpu_info()
        val = getattr(info, "vmem_capacity_bytes", None)
        if isinstance(val, (int, np.integer)) and int(val) > 0:
            vmem = int(val)
    except Exception:
        pass
    return cores, vmem


def _atan_pos(x):
    """arctan for x >= 0: one argument inversion + degree-11 minimax poly on [0,1].

    Poly max abs error ~1e-5; the approx reciprocal on the inverted branch adds
    ~2.4e-4 — both far below the test tolerance.  One EUP push total (the previous
    half-angle version needed a sqrt and two reciprocals).
    """
    inv = x > 1.0
    y = jnp.where(inv, pl.reciprocal(jnp.maximum(x, 1.0), approx=True), x)
    z = y * y
    p = y * (0.99997726 + z * (-0.33262347 + z * (0.19354346 + z * (-0.11643287
             + z * (0.05265332 + z * (-0.01172120))))))
    return jnp.where(inv, (0.5 * math.pi) - p, p)


def _collapse(x):
    """(TR, 128) -> (8, 128): sum vreg-sized sublane groups with full-vreg VALU adds
    (no cross-sublane XLU reduce, no masked stores)."""
    tr = x.shape[0]
    if tr == 8:
        return x
    return jnp.sum(x.reshape(tr // 8, 8, LANE), axis=0)


def yolo_loss_kernel(pred_ref, tgt_ref, out_ref, acc_ref):
    # pred_ref: (12, TR, 128) bf16   tgt_ref: (6, TR, 128) f32
    # out_ref : (1, 4, 8, 128) f32 partial sums for this parallel chunk
    # acc_ref : (4, 8, 128)    f32 VMEM accumulator [focal, box, ce, n_obj]
    r = pl.program_id(1)
    nt = pl.num_programs(1)

    @pl.when(r == 0)
    def _init():
        acc_ref[...] = jnp.zeros_like(acc_ref)

    f32 = jnp.float32
    tconf = tgt_ref[0]
    obj = tconf == 1.0
    tx = tgt_ref[1]
    ty = tgt_ref[2]
    tw = tgt_ref[3]
    th = tgt_ref[4]

    # ---- decode predicted box; log(anchor) was folded into channels 3/4 by the wrapper ----
    x1 = pred_ref[1].astype(f32)
    x2 = pred_ref[2].astype(f32)
    e1 = jnp.exp(-jnp.abs(x1))
    e2 = jnp.exp(-jnp.abs(x2))
    d1 = 1.0 + e1
    d2 = 1.0 + e2
    r12 = pl.reciprocal(d1 * d2, approx=True)     # one EUP push for both xy sigmoids
    i1 = r12 * d2
    i2 = r12 * d1
    px = jnp.where(x1 >= 0.0, i1, e1 * i1)
    py = jnp.where(x2 >= 0.0, i2, e2 * i2)
    pw = jnp.exp(pred_ref[3].astype(f32))
    ph = jnp.exp(pred_ref[4].astype(f32))

    b1x1 = px - 0.5 * pw
    b1x2 = px + 0.5 * pw
    b1y1 = py - 0.5 * ph
    b1y2 = py + 0.5 * ph
    b2x1 = tx - 0.5 * tw
    b2x2 = tx + 0.5 * tw
    b2y1 = ty - 0.5 * th
    b2y2 = ty + 0.5 * th

    iw = jnp.maximum(jnp.minimum(b1x2, b2x2) - jnp.maximum(b1x1, b2x1), 0.0)
    ih = jnp.maximum(jnp.minimum(b1y2, b2y2) - jnp.maximum(b1y1, b2y1), 0.0)
    inter = iw * ih
    union = jnp.abs(pw * ph) + jnp.abs(tw * th) - inter + IOU_EPS

    # merged reciprocal: 1/union and 1/(atan denominator) from one EUP push
    thp = th + CIOU_EPS
    php = ph + CIOU_EPS
    den2 = thp * php + tw * pw
    ru = pl.reciprocal(union * den2, approx=True)
    iou = inter * (ru * den2)
    inv_den2 = ru * union

    # ---------------- CIoU box term first (box-corner temporaries die early) ----------------
    cw = jnp.maximum(b1x2, b2x2) - jnp.minimum(b1x1, b2x1)
    ch = jnp.maximum(b1y2, b2y2) - jnp.minimum(b1y1, b2y1)
    c2 = cw * cw + ch * ch + CIOU_EPS
    dx = b2x1 + b2x2 - b1x1 - b1x2
    dy = b2y1 + b2y2 - b1y1 - b1y2
    rho2 = (dx * dx + dy * dy) * 0.25
    # atan(tw/thp) - atan(pw/php) == atan(u), u = (a-b)/(1+ab); only u^2 is used -> one atan.
    u_abs = jnp.abs(tw * php - pw * thp) * inv_den2
    at = _atan_pos(u_abs)
    v = (4.0 / (math.pi * math.pi)) * (at * at)
    bden = v - iou + 1.0 + CIOU_EPS
    rc = pl.reciprocal(c2 * bden, approx=True)    # merged reciprocal: 1/c2 and 1/bden
    alpha_c = v * (rc * c2)
    ciou = iou - (rho2 * (rc * bden) + v * alpha_c)
    acc_ref[1] += _collapse(jnp.where(obj, 1.0 - ciou, 0.0))
    acc_ref[3] += _collapse(obj.astype(f32))

    # ---------------- focal BCE-with-logits on the objectness logit (all cells) ----------------
    # Padded cells have logit == PRED_PAD and tconf == 0 -> exactly 0 contribution.
    x = pred_ref[0].astype(f32)
    t = jnp.where(obj, iou, tconf)
    e = jnp.exp(-jnp.abs(x))
    bce = jnp.maximum(x, 0.0) - x * t + jnp.log(1.0 + e)
    ip = pl.reciprocal(1.0 + e, approx=True)
    p = jnp.where(x >= 0.0, ip, e * ip)            # sigmoid(x) reusing exp(-|x|)
    p_t = t * p + (1.0 - t) * (1.0 - p)
    af = t * ALPHA + (1.0 - t) * (1.0 - ALPHA)
    om = 1.0 - p_t
    acc_ref[0] += _collapse(bce * af * (om * om))  # gamma == 2

    # ---------------- cross-entropy over the 7 class logits (object cells only) ----------------
    logits = pred_ref[pl.ds(5, NUM_CLASSES)].astype(f32)    # (7, TR, 128)
    labels = tgt_ref[5].astype(jnp.int32)                   # (TR, 128)
    cls_idx = lax.broadcasted_iota(jnp.int32, logits.shape, 0)
    onehot = (cls_idx == labels[None, :, :]).astype(f32)
    m = jnp.max(logits, axis=0)
    lse = jnp.log(jnp.sum(jnp.exp(logits - m[None, :, :]), axis=0)) + m
    picked = jnp.sum(onehot * logits, axis=0)
    acc_ref[2] += _collapse(jnp.where(obj, lse - picked, 0.0))

    @pl.when(r == nt - 1)
    def _finalize():
        out_ref[0] = acc_ref[...]


def pallas_yolo_loss(predictions, target, anchors):
    """predictions (B,3,S,S,12), target (B,3,S,S,6), anchors (3,2) -> scalar loss."""
    B, A, S1, S2, Cp = predictions.shape
    Ct = target.shape[-1]
    N = B * A * S1 * S2

    nc, vmem_bytes = _tpu_cores_and_vmem()
    # TR cap / VMEM budget per generation (review): 512 & 48 MiB on 64-MiB-VMEM v7x,
    # 1024 & 64 MiB on 128-MiB v5e/v6e.
    tr_cap = 1024 if vmem_bytes >= 100 * 1024 * 1024 else 512
    vmem_limit = (64 if tr_cap == 1024 else 48) * 1024 * 1024

    def _rup(x, m):
        return ((x + m - 1) // m) * m

    rows = -(-N // LANE)
    rows_per_chunk = -(-rows // nc)
    TR = min(tr_cap, _rup(max(rows_per_chunk, 1), 16))   # mult. of 16 (bf16 sublane tile)
    nt = -(-rows_per_chunk // TR)                        # tiles per parallel chunk
    rows_pad = nc * nt * TR
    n_pad = rows_pad * LANE

    # Fold anchors into the w/h logits (exp(t + log a) == exp(t) * a) with a broadcast
    # add that fuses into the transpose/convert/pad chain -> no extra HBM pass and no
    # per-cell anchor stream.
    log_anc = jnp.log(anchors.astype(jnp.float32))                  # (3, 2)
    offs = jnp.zeros((Cp, 1, A, 1, 1), jnp.float32)
    offs = offs.at[3, 0, :, 0, 0].set(log_anc[:, 0])
    offs = offs.at[4, 0, :, 0, 0].set(log_anc[:, 1])

    # One fused layout pass per tensor: channel-major transpose (+ anchor add), cast,
    # pad the flattened cell axis.  Predictions travel as bf16; padding every pred
    # channel with PRED_PAD makes padded cells contribute exactly 0 (focal, box, CE,
    # n_obj), so the kernel needs no validity mask.  Targets stay f32.
    pred_r = jnp.pad(
        (jnp.moveaxis(predictions.astype(jnp.float32), -1, 0) + offs)
        .astype(jnp.bfloat16).reshape(Cp, N),
        ((0, 0), (0, n_pad - N)), constant_values=PRED_PAD,
    ).reshape(Cp, rows_pad, LANE)
    tgt_r = jnp.pad(
        jnp.moveaxis(target.astype(jnp.float32), -1, 0).reshape(Ct, N),
        ((0, 0), (0, n_pad - N)),
    ).reshape(Ct, rows_pad, LANE)

    if nc > 1:
        # Explicit 2-TensorCore split on multi-core chips (v7x): plain "parallel" was
        # measured as a codegen no-op, CORE_PARALLEL actually splits the leading axis.
        dims = (getattr(pltpu, "CORE_PARALLEL", "parallel"), "arbitrary")
    else:
        dims = ("arbitrary", "arbitrary")

    grid_spec = pltpu.PrefetchScalarGridSpec(
        num_scalar_prefetch=0,
        grid=(nc, nt),
        in_specs=[
            pl.BlockSpec((Cp, TR, LANE), lambda c, r: (0, c * nt + r, 0)),
            pl.BlockSpec((Ct, TR, LANE), lambda c, r: (0, c * nt + r, 0)),
        ],
        out_specs=pl.BlockSpec((1, 4, 8, LANE), lambda c, r: (c, 0, 0, 0)),
        scratch_shapes=[pltpu.VMEM((4, 8, LANE), jnp.float32)],
    )

    partials = pl.pallas_call(
        yolo_loss_kernel,
        out_shape=jax.ShapeDtypeStruct((nc, 4, 8, LANE), jnp.float32),
        grid_spec=grid_spec,
        compiler_params=pltpu.CompilerParams(
            dimension_semantics=dims,
            vmem_limit_bytes=vmem_limit),
    )(pred_r, tgt_r)

    sums = jnp.sum(partials, axis=(0, 2, 3))             # (4,) [focal, box, ce, n_obj]
    focal_sum, box_sum, ce_sum, n_obj = sums[0], sums[1], sums[2], sums[3]
    object_loss = focal_sum / jnp.float32(N)
    # NOTE: matches the reference exactly -> NaN if a batch has zero object cells.
    box_loss = box_sum / n_obj
    class_loss = ce_sum / n_obj
    return object_loss + box_loss + class_loss


def reference_loss(pred, tgt, anc):
    """Pure-numpy (float64) mirror of the PyTorch forward, for verification."""
    pred = pred.astype(np.float64)
    tgt = tgt.astype(np.float64)
    anc = anc.astype(np.float64)
    obj = tgt[..., 0] == 1.0
    anc_r = anc.reshape(1, 3, 1, 1, 2)
    sig = lambda z: 1.0 / (1.0 + np.exp(-z))

    px = sig(pred[..., 1]); py = sig(pred[..., 2])
    pw = np.exp(pred[..., 3]) * anc_r[..., 0]
    ph = np.exp(pred[..., 4]) * anc_r[..., 1]
    tx, ty, tw, th = tgt[..., 1], tgt[..., 2], tgt[..., 3], tgt[..., 4]

    b1x1, b1x2 = px - pw / 2, px + pw / 2
    b1y1, b1y2 = py - ph / 2, py + ph / 2
    b2x1, b2x2 = tx - tw / 2, tx + tw / 2
    b2y1, b2y2 = ty - th / 2, ty + th / 2

    iw = np.clip(np.minimum(b1x2, b2x2) - np.maximum(b1x1, b2x1), 0, None)
    ih = np.clip(np.minimum(b1y2, b2y2) - np.maximum(b1y1, b2y1), 0, None)
    inter = iw * ih
    area1 = np.abs((b1x2 - b1x1) * (b1y2 - b1y1))
    area2 = np.abs((b2x2 - b2x1) * (b2y2 - b2y1))
    union = area1 + area2 - inter
    iou = inter / (union + IOU_EPS)

    real_conf = np.where(obj, iou * tgt[..., 0], tgt[..., 0])
    x = pred[..., 0]
    bce = np.maximum(x, 0) - x * real_conf + np.log1p(np.exp(-np.abs(x)))
    p = sig(x)
    p_t = real_conf * p + (1 - real_conf) * (1 - p)
    af = real_conf * ALPHA + (1 - real_conf) * (1 - ALPHA)
    object_loss = (bce * af * (1 - p_t) ** 2).mean()

    iou_c = inter / (union + CIOU_EPS)
    cw = np.maximum(b1x2, b2x2) - np.minimum(b1x1, b2x1)
    ch = np.maximum(b1y2, b2y2) - np.minimum(b1y1, b2y1)
    c2 = cw ** 2 + ch ** 2 + CIOU_EPS
    rho2 = ((b2x1 + b2x2 - b1x1 - b1x2) ** 2 + (b2y1 + b2y2 - b1y1 - b1y2) ** 2) / 4.0
    v = (4.0 / np.pi ** 2) * (np.arctan(tw / (th + CIOU_EPS))
                              - np.arctan(pw / (ph + CIOU_EPS))) ** 2
    alpha_c = v / (v - iou_c + 1.0 + CIOU_EPS)
    ciou = iou_c - (rho2 / c2 + v * alpha_c)
    box_loss = (1.0 - ciou[obj]).mean()

    logits = pred[..., 5:][obj]
    labels = tgt[..., 5][obj].astype(np.int64)
    m = logits.max(axis=-1, keepdims=True)
    lse = np.log(np.exp(logits - m).sum(-1, keepdims=True)) + m
    class_loss = (lse.squeeze(-1) - logits[np.arange(len(labels)), labels]).mean()

    return float(object_loss + box_loss + class_loss)


if __name__ == "__main__":
    key = jax.random.PRNGKey(0)
    B, A, S = 2, 3, 8
    k1, k2, k3, k4, k5 = jax.random.split(key, 5)

    predictions = 0.5 * jax.random.normal(k1, (B, A, S, S, 5 + NUM_CLASSES), dtype=jnp.float32)
    conf = (jax.random.uniform(k2, (B, A, S, S)) < 0.2).astype(jnp.float32)
    conf = conf.at[0, 0, 0, 0].set(1.0)          # guarantee at least one object cell
    xy = jax.random.uniform(k3, (B, A, S, S, 2), minval=0.05, maxval=0.95)
    wh = jax.random.uniform(k4, (B, A, S, S, 2), minval=0.5, maxval=3.0)
    labels = jax.random.randint(k5, (B, A, S, S), 0, NUM_CLASSES).astype(jnp.float32)
    target = jnp.concatenate([conf[..., None], xy, wh, labels[..., None]], axis=-1)
    anchors = jnp.array([[1.0, 1.5], [2.0, 2.5], [3.5, 3.0]], dtype=jnp.float32)

    loss_fn = jax.jit(pallas_yolo_loss)
    loss = loss_fn(predictions, target, anchors)
    loss = jax.block_until_ready(loss)

    ref = reference_loss(np.asarray(predictions), np.asarray(target), np.asarray(anchors))
    assert np.isfinite(float(loss)), float(loss)
    assert abs(float(loss) - ref) <= 2e-3 * max(1.0, abs(ref)), (float(loss), ref)
    print("KERNEL_OK")
</pallas_src>

<mosaic_0001>
module attributes {stable_mosaic.version = 11 : i64} {
  func.func @yolo_loss_kernel(%arg0: i32, %arg1: i32, %arg2: memref<12x16x128xbf16, #tpu.memory_space<vmem>>, %arg3: memref<6x16x128xf32, #tpu.memory_space<vmem>>, %arg4: memref<1x4x8x128xf32, #tpu.memory_space<vmem>>, %arg5: memref<4x8x128xf32, #tpu.memory_space<vmem>>) attributes {dimension_semantics = [#tpu.dimension_semantics<arbitrary>, #tpu.dimension_semantics<arbitrary>], iteration_bounds = array<i64: 1, 1>, scalar_prefetch = 0 : i64, scratch_operands = 1 : i64, tpu.core_type = #tpu.core_type<tc>, window_params = [{transform_indices = @transform_0, window_bounds = array<i64: 12, 16, 128>}, {transform_indices = @transform_1, window_bounds = array<i64: 6, 16, 128>}, {transform_indices = @transform_2, window_bounds = array<i64: 1, 4, 8, 128>}]} {
    %c0_i32 = arith.constant 0 : i32
    %0 = arith.cmpi eq, %arg1, %c0_i32 : i32
    %1 = arith.extui %0 : i1 to i32
    %c0_i32_0 = arith.constant 0 : i32
    %2 = arith.cmpi ne, %1, %c0_i32_0 : i32
    scf.if %2 {
      %cst_111 = arith.constant 0.000000e+00 : f32
      %286 = vector.broadcast %cst_111 : f32 to vector<4x8x128xf32>
      %c0_112 = arith.constant 0 : index
      %c0_113 = arith.constant 0 : index
      %c0_114 = arith.constant 0 : index
      %287 = vector.load %arg5[%c0_112, %c0_113, %c0_114] : memref<4x8x128xf32, #tpu.memory_space<vmem>>, vector<4x8x128xf32>
      tpu.vector_store %arg5[%c0_112, %c0_113, %c0_114], %286 {strides = array<i32>} : memref<4x8x128xf32, #tpu.memory_space<vmem>>, vector<4x8x128xf32>,
    } else {
    }
    %c0 = arith.constant 0 : index
    %c0_1 = arith.constant 0 : index
    %c0_2 = arith.constant 0 : index
    %3 = vector.load %arg3[%c0, %c0_1, %c0_2] : memref<6x16x128xf32, #tpu.memory_space<vmem>>, vector<1x16x128xf32>
    %4 = vector.shape_cast %3 : vector<1x16x128xf32> to vector<16x128xf32>
    %cst = arith.constant 1.000000e+00 : f32
    %5 = vector.broadcast %cst : f32 to vector<16x128xf32>
    %6 = arith.cmpf oeq, %4, %5 : vector<16x128xf32>
    %c1 = arith.constant 1 : index
    %c0_3 = arith.constant 0 : index
    %c0_4 = arith.constant 0 : index
    %7 = vector.load %arg3[%c1, %c0_3, %c0_4] : memref<6x16x128xf32, #tpu.memory_space<vmem>>, vector<1x16x128xf32>
    %8 = vector.shape_cast %7 : vector<1x16x128xf32> to vector<16x128xf32>
    %c2 = arith.constant 2 : index
    %c0_5 = arith.constant 0 : index
    %c0_6 = arith.constant 0 : index
    %9 = vector.load %arg3[%c2, %c0_5, %c0_6] : memref<6x16x128xf32, #tpu.memory_space<vmem>>, vector<1x16x128xf32>
    %10 = vector.shape_cast %9 : vector<1x16x128xf32> to vector<16x128xf32>
    %c3 = arith.constant 3 : index
    %c0_7 = arith.constant 0 : index
    %c0_8 = arith.constant 0 : index
    %11 = vector.load %arg3[%c3, %c0_7, %c0_8] : memref<6x16x128xf32, #tpu.memory_space<vmem>>, vector<1x16x128xf32>
    %12 = vector.shape_cast %11 : vector<1x16x128xf32> to vector<16x128xf32>
    %c4 = arith.constant 4 : index
    %c0_9 = arith.constant 0 : index
    %c0_10 = arith.constant 0 : index
    %13 = vector.load %arg3[%c4, %c0_9, %c0_10] : memref<6x16x128xf32, #tpu.memory_space<vmem>>, vector<1x16x128xf32>
    %14 = vector.shape_cast %13 : vector<1x16x128xf32> to vector<16x128xf32>
    %c1_11 = arith.constant 1 : index
    %c0_12 = arith.constant 0 : index
    %c0_13 = arith.constant 0 : index
    %15 = vector.load %arg2[%c1_11, %c0_12, %c0_13] : memref<12x16x128xbf16, #tpu.memory_space<vmem>>, vector<1x16x128xbf16>
    %16 = vector.shape_cast %15 : vector<1x16x128xbf16> to vector<16x128xbf16>
    %17 = arith.extf %16 : vector<16x128xbf16> to vector<16x128xf32>
    %c2_14 = arith.constant 2 : index
    %c0_15 = arith.constant 0 : index
    %c0_16 = arith.constant 0 : index
    %18 = vector.load %arg2[%c2_14, %c0_15, %c0_16] : memref<12x16x128xbf16, #tpu.memory_space<vmem>>, vector<1x16x128xbf16>
    %19 = vector.shape_cast %18 : vector<1x16x128xbf16> to vector<16x128xbf16>
    %20 = arith.extf %19 : vector<16x128xbf16> to vector<16x128xf32>
    %21 = math.absf %17 : vector<16x128xf32>
    %cst_17 = arith.constant 0.000000e+00 : f32
    %22 = vector.broadcast %cst_17 : f32 to vector<16x128xf32>
    %23 = arith.subf %22, %21 : vector<16x128xf32>
    %24 = math.exp %23 : vector<16x128xf32>
    %25 = math.absf %20 : vector<16x128xf32>
    %cst_18 = arith.constant 0.000000e+00 : f32
    %26 = vector.broadcast %cst_18 : f32 to vector<16x128xf32>
    %27 = arith.subf %26, %25 : vector<16x128xf32>
    %28 = math.exp %27 : vector<16x128xf32>
    %cst_19 = arith.constant 1.000000e+00 : f32
    %29 = vector.broadcast %cst_19 : f32 to vector<16x128xf32>
    %30 = arith.addf %29, %24 : vector<16x128xf32>
    %cst_20 = arith.constant 1.000000e+00 : f32
    %31 = vector.broadcast %cst_20 : f32 to vector<16x128xf32>
    %32 = arith.addf %31, %28 : vector<16x128xf32>
    %33 = arith.mulf %30, %32 : vector<16x128xf32>
    %34 = tpu.reciprocal %33 {approx = true} : vector<16x128xf32> -> vector<16x128xf32>
    %35 = arith.mulf %34, %32 : vector<16x128xf32>
    %36 = arith.mulf %34, %30 : vector<16x128xf32>
    %cst_21 = arith.constant 0.000000e+00 : f32
    %37 = vector.broadcast %cst_21 : f32 to vector<16x128xf32>
    %38 = arith.cmpf oge, %17, %37 : vector<16x128xf32>
    %39 = arith.mulf %24, %35 : vector<16x128xf32>
    %40 = arith.select %38, %35, %39 : vector<16x128xi1>, vector<16x128xf32>
    %cst_22 = arith.constant 0.000000e+00 : f32
    %41 = vector.broadcast %cst_22 : f32 to vector<16x128xf32>
    %42 = arith.cmpf oge, %20, %41 : vector<16x128xf32>
    %43 = arith.mulf %28, %36 : vector<16x128xf32>
    %44 = arith.select %42, %36, %43 : vector<16x128xi1>, vector<16x128xf32>
    %c3_23 = arith.constant 3 : index
    %c0_24 = arith.constant 0 : index
    %c0_25 = arith.constant 0 : index
    %45 = vector.load %arg2[%c3_23, %c0_24, %c0_25] : memref<12x16x128xbf16, #tpu.memory_space<vmem>>, vector<1x16x128xbf16>
    %46 = vector.shape_cast %45 : vector<1x16x128xbf16> to vector<16x128xbf16>
    %47 = arith.extf %46 : vector<16x128xbf16> to vector<16x128xf32>
    %48 = math.exp %47 : vector<16x128xf32>
    %c4_26 = arith.constant 4 : index
    %c0_27 = arith.constant 0 : index
    %c0_28 = arith.constant 0 : index
    %49 = vector.load %arg2[%c4_26, %c0_27, %c0_28] : memref<12x16x128xbf16, #tpu.memory_space<vmem>>, vector<1x16x128xbf16>
    %50 = vector.shape_cast %49 : vector<1x16x128xbf16> to vector<16x128xbf16>
    %51 = arith.extf %50 : vector<16x128xbf16> to vector<16x128xf32>
    %52 = math.exp %51 : vector<16x128xf32>
    %cst_29 = arith.constant 5.000000e-01 : f32
    %53 = vector.broadcast %cst_29 : f32 to vector<16x128xf32>
    %54 = arith.mulf %53, %48 : vector<16x128xf32>
    %55 = arith.subf %40, %54 : vector<16x128xf32>
    %cst_30 = arith.constant 5.000000e-01 : f32
    %56 = vector.broadcast %cst_30 : f32 to vector<16x128xf32>
    %57 = arith.mulf %56, %48 : vector<16x128xf32>
    %58 = arith.addf %40, %57 : vector<16x128xf32>
    %cst_31 = arith.constant 5.000000e-01 : f32
    %59 = vector.broadcast %cst_31 : f32 to vector<16x128xf32>
    %60 = arith.mulf %59, %52 : vector<16x128xf32>
    %61 = arith.subf %44, %60 : vector<16x128xf32>
    %cst_32 = arith.constant 5.000000e-01 : f32
    %62 = vector.broadcast %cst_32 : f32 to vector<16x128xf32>
    %63 = arith.mulf %62, %52 : vector<16x128xf32>
    %64 = arith.addf %44, %63 : vector<16x128xf32>
    %cst_33 = arith.constant 5.000000e-01 : f32
    %65 = vector.broadcast %cst_33 : f32 to vector<16x128xf32>
    %66 = arith.mulf %65, %12 : vector<16x128xf32>
    %67 = arith.subf %8, %66 : vector<16x128xf32>
    %cst_34 = arith.constant 5.000000e-01 : f32
    %68 = vector.broadcast %cst_34 : f32 to vector<16x128xf32>
    %69 = arith.mulf %68, %12 : vector<16x128xf32>
    %70 = arith.addf %8, %69 : vector<16x128xf32>
    %cst_35 = arith.constant 5.000000e-01 : f32
    %71 = vector.broadcast %cst_35 : f32 to vector<16x128xf32>
    %72 = arith.mulf %71, %14 : vector<16x128xf32>
    %73 = arith.subf %10, %72 : vector<16x128xf32>
    %cst_36 = arith.constant 5.000000e-01 : f32
    %74 = vector.broadcast %cst_36 : f32 to vector<16x128xf32>
    %75 = arith.mulf %74, %14 : vector<16x128xf32>
    %76 = arith.addf %10, %75 : vector<16x128xf32>
    %77 = arith.minimumf %58, %70 : vector<16x128xf32>
    %78 = arith.maximumf %55, %67 : vector<16x128xf32>
    %79 = arith.subf %77, %78 : vector<16x128xf32>
    %cst_37 = arith.constant 0.000000e+00 : f32
    %80 = vector.broadcast %cst_37 : f32 to vector<16x128xf32>
    %81 = arith.maximumf %79, %80 : vector<16x128xf32>
    %82 = arith.minimumf %64, %76 : vector<16x128xf32>
    %83 = arith.maximumf %61, %73 : vector<16x128xf32>
    %84 = arith.subf %82, %83 : vector<16x128xf32>
    %cst_38 = arith.constant 0.000000e+00 : f32
    %85 = vector.broadcast %cst_38 : f32 to vector<16x128xf32>
    %86 = arith.maximumf %84, %85 : vector<16x128xf32>
    %87 = arith.mulf %81, %86 : vector<16x128xf32>
    %88 = arith.mulf %48, %52 : vector<16x128xf32>
    %89 = math.absf %88 : vector<16x128xf32>
    %90 = arith.mulf %12, %14 : vector<16x128xf32>
    %91 = math.absf %90 : vector<16x128xf32>
    %92 = arith.addf %89, %91 : vector<16x128xf32>
    %93 = arith.subf %92, %87 : vector<16x128xf32>
    %cst_39 = arith.constant 9.99999997E-7 : f32
    %94 = vector.broadcast %cst_39 : f32 to vector<16x128xf32>
    %95 = arith.addf %93, %94 : vector<16x128xf32>
    %cst_40 = arith.constant 1.000000e-07 : f32
    %96 = vector.broadcast %cst_40 : f32 to vector<16x128xf32>
    %97 = arith.addf %14, %96 : vector<16x128xf32>
    %cst_41 = arith.constant 1.000000e-07 : f32
    %98 = vector.broadcast %cst_41 : f32 to vector<16x128xf32>
    %99 = arith.addf %52, %98 : vector<16x128xf32>
    %100 = arith.mulf %97, %99 : vector<16x128xf32>
    %101 = arith.mulf %12, %48 : vector<16x128xf32>
    %102 = arith.addf %100, %101 : vector<16x128xf32>
    %103 = arith.mulf %95, %102 : vector<16x128xf32>
    %104 = tpu.reciprocal %103 {approx = true} : vector<16x128xf32> -> vector<16x128xf32>
    %105 = arith.mulf %104, %102 : vector<16x128xf32>
    %106 = arith.mulf %87, %105 : vector<16x128xf32>
    %107 = arith.mulf %104, %95 : vector<16x128xf32>
    %108 = arith.maximumf %58, %70 : vector<16x128xf32>
    %109 = arith.minimumf %55, %67 : vector<16x128xf32>
    %110 = arith.subf %108, %109 : vector<16x128xf32>
    %111 = arith.maximumf %64, %76 : vector<16x128xf32>
    %112 = arith.minimumf %61, %73 : vector<16x128xf32>
    %113 = arith.subf %111, %112 : vector<16x128xf32>
    %114 = arith.mulf %110, %110 : vector<16x128xf32>
    %115 = arith.mulf %113, %113 : vector<16x128xf32>
    %116 = arith.addf %114, %115 : vector<16x128xf32>
    %cst_42 = arith.constant 1.000000e-07 : f32
    %117 = vector.broadcast %cst_42 : f32 to vector<16x128xf32>
    %118 = arith.addf %116, %117 : vector<16x128xf32>
    %119 = arith.addf %67, %70 : vector<16x128xf32>
    %120 = arith.subf %119, %55 : vector<16x128xf32>
    %121 = arith.subf %120, %58 : vector<16x128xf32>
    %122 = arith.addf %73, %76 : vector<16x128xf32>
    %123 = arith.subf %122, %61 : vector<16x128xf32>
    %124 = arith.subf %123, %64 : vector<16x128xf32>
    %125 = arith.mulf %121, %121 : vector<16x128xf32>
    %126 = arith.mulf %124, %124 : vector<16x128xf32>
    %127 = arith.addf %125, %126 : vector<16x128xf32>
    %cst_43 = arith.constant 2.500000e-01 : f32
    %128 = vector.broadcast %cst_43 : f32 to vector<16x128xf32>
    %129 = arith.mulf %127, %128 : vector<16x128xf32>
    %130 = arith.mulf %12, %99 : vector<16x128xf32>
    %131 = arith.mulf %48, %97 : vector<16x128xf32>
    %132 = arith.subf %130, %131 : vector<16x128xf32>
    %133 = math.absf %132 : vector<16x128xf32>
    %134 = arith.mulf %133, %107 : vector<16x128xf32>
    %cst_44 = arith.constant 1.000000e+00 : f32
    %135 = vector.broadcast %cst_44 : f32 to vector<16x128xf32>
    %136 = arith.cmpf ogt, %134, %135 : vector<16x128xf32>
    %cst_45 = arith.constant 1.000000e+00 : f32
    %137 = vector.broadcast %cst_45 : f32 to vector<16x128xf32>
    %138 = arith.maximumf %134, %137 : vector<16x128xf32>
    %139 = tpu.reciprocal %138 {approx = true} : vector<16x128xf32> -> vector<16x128xf32>
    %140 = arith.select %136, %139, %134 : vector<16x128xi1>, vector<16x128xf32>
    %141 = arith.mulf %140, %140 : vector<16x128xf32>
    %cst_46 = arith.constant -1.172120e-02 : f32
    %142 = vector.broadcast %cst_46 : f32 to vector<16x128xf32>
    %143 = arith.mulf %141, %142 : vector<16x128xf32>
    %cst_47 = arith.constant 0.0526533201 : f32
    %144 = vector.broadcast %cst_47 : f32 to vector<16x128xf32>
    %145 = arith.addf %144, %143 : vector<16x128xf32>
    %146 = arith.mulf %141, %145 : vector<16x128xf32>
    %cst_48 = arith.constant -0.116432868 : f32
    %147 = vector.broadcast %cst_48 : f32 to vector<16x128xf32>
    %148 = arith.addf %147, %146 : vector<16x128xf32>
    %149 = arith.mulf %141, %148 : vector<16x128xf32>
    %cst_49 = arith.constant 0.193543464 : f32
    %150 = vector.broadcast %cst_49 : f32 to vector<16x128xf32>
    %151 = arith.addf %150, %149 : vector<16x128xf32>
    %152 = arith.mulf %141, %151 : vector<16x128xf32>
    %cst_50 = arith.constant -0.332623482 : f32
    %153 = vector.broadcast %cst_50 : f32 to vector<16x128xf32>
    %154 = arith.addf %153, %152 : vector<16x128xf32>
    %155 = arith.mulf %141, %154 : vector<16x128xf32>
    %cst_51 = arith.constant 0.999977231 : f32
    %156 = vector.broadcast %cst_51 : f32 to vector<16x128xf32>
    %157 = arith.addf %156, %155 : vector<16x128xf32>
    %158 = arith.mulf %140, %157 : vector<16x128xf32>
    %cst_52 = arith.constant 1.57079637 : f32
    %159 = vector.broadcast %cst_52 : f32 to vector<16x128xf32>
    %160 = arith.subf %159, %158 : vector<16x128xf32>
    %161 = arith.select %136, %160, %158 : vector<16x128xi1>, vector<16x128xf32>
    %162 = arith.mulf %161, %161 : vector<16x128xf32>
    %cst_53 = arith.constant 0.405284733 : f32
    %163 = vector.broadcast %cst_53 : f32 to vector<16x128xf32>
    %164 = arith.mulf %163, %162 : vector<16x128xf32>
    %165 = arith.subf %164, %106 : vector<16x128xf32>
    %cst_54 = arith.constant 1.000000e+00 : f32
    %166 = vector.broadcast %cst_54 : f32 to vector<16x128xf32>
    %167 = arith.addf %165, %166 : vector<16x128xf32>
    %cst_55 = arith.constant 1.000000e-07 : f32
    %168 = vector.broadcast %cst_55 : f32 to vector<16x128xf32>
    %169 = arith.addf %167, %168 : vector<16x128xf32>
    %170 = arith.mulf %118, %169 : vector<16x128xf32>
    %171 = tpu.reciprocal %170 {approx = true} : vector<16x128xf32> -> vector<16x128xf32>
    %172 = arith.mulf %171, %118 : vector<16x128xf32>
    %173 = arith.mulf %164, %172 : vector<16x128xf32>
    %174 = arith.mulf %171, %169 : vector<16x128xf32>
    %175 = arith.mulf %129, %174 : vector<16x128xf32>
    %176 = arith.mulf %164, %173 : vector<16x128xf32>
    %177 = arith.addf %175, %176 : vector<16x128xf32>
    %178 = arith.subf %106, %177 : vector<16x128xf32>
    %c1_56 = arith.constant 1 : index
    %c0_57 = arith.constant 0 : index
    %c0_58 = arith.constant 0 : index
    %179 = vector.load %arg5[%c1_56, %c0_57, %c0_58] : memref<4x8x128xf32, #tpu.memory_space<vmem>>, vector<1x8x128xf32>
    %180 = vector.shape_cast %179 : vector<1x8x128xf32> to vector<8x128xf32>
    %cst_59 = arith.constant 1.000000e+00 : f32
    %181 = vector.broadcast %cst_59 : f32 to vector<16x128xf32>
    %182 = arith.subf %181, %178 : vector<16x128xf32>
    %cst_60 = arith.constant 0.000000e+00 : f32
    %183 = vector.broadcast %cst_60 : f32 to vector<16x128xf32>
    %184 = arith.select %6, %182, %183 : vector<16x128xi1>, vector<16x128xf32>
    %185 = vector.shape_cast %184 : vector<16x128xf32> to vector<2x8x128xf32>
    %cst_61 = arith.constant dense<0.000000e+00> : vector<8x128xf32>
    %186 = vector.multi_reduction <add>, %185, %cst_61 [0] : vector<2x8x128xf32> to vector<8x128xf32>
    %187 = arith.addf %180, %186 : vector<8x128xf32>
    %c1_62 = arith.constant 1 : index
    %c0_63 = arith.constant 0 : index
    %c0_64 = arith.constant 0 : index
    %188 = vector.load %arg5[%c1_62, %c0_63, %c0_64] : memref<4x8x128xf32, #tpu.memory_space<vmem>>, vector<1x8x128xf32>
    %189 = vector.shape_cast %188 : vector<1x8x128xf32> to vector<8x128xf32>
    %190 = vector.shape_cast %187 : vector<8x128xf32> to vector<1x8x128xf32>
    tpu.vector_store %arg5[%c1_62, %c0_63, %c0_64], %190 {strides = array<i32>} : memref<4x8x128xf32, #tpu.memory_space<vmem>>, vector<1x8x128xf32>,
    %c3_65 = arith.constant 3 : index
    %c0_66 = arith.constant 0 : index
    %c0_67 = arith.constant 0 : index
    %191 = vector.load %arg5[%c3_65, %c0_66, %c0_67] : memref<4x8x128xf32, #tpu.memory_space<vmem>>, vector<1x8x128xf32>
    %192 = vector.shape_cast %191 : vector<1x8x128xf32> to vector<8x128xf32>
    %193 = arith.extui %6 : vector<16x128xi1> to vector<16x128xi32>
    %194 = arith.sitofp %193 : vector<16x128xi32> to vector<16x128xf32>
    %195 = vector.shape_cast %194 : vector<16x128xf32> to vector<2x8x128xf32>
    %cst_68 = arith.constant dense<0.000000e+00> : vector<8x128xf32>
    %196 = vector.multi_reduction <add>, %195, %cst_68 [0] : vector<2x8x128xf32> to vector<8x128xf32>
    %197 = arith.addf %192, %196 : vector<8x128xf32>
    %c3_69 = arith.constant 3 : index
    %c0_70 = arith.constant 0 : index
    %c0_71 = arith.constant 0 : index
    %198 = vector.load %arg5[%c3_69, %c0_70, %c0_71] : memref<4x8x128xf32, #tpu.memory_space<vmem>>, vector<1x8x128xf32>
    %199 = vector.shape_cast %198 : vector<1x8x128xf32> to vector<8x128xf32>
    %200 = vector.shape_cast %197 : vector<8x128xf32> to vector<1x8x128xf32>
    tpu.vector_store %arg5[%c3_69, %c0_70, %c0_71], %200 {strides = array<i32>} : memref<4x8x128xf32, #tpu.memory_space<vmem>>, vector<1x8x128xf32>,
    %c0_72 = arith.constant 0 : index
    %c0_73 = arith.constant 0 : index
    %c0_74 = arith.constant 0 : index
    %201 = vector.load %arg2[%c0_72, %c0_73, %c0_74] : memref<12x16x128xbf16, #tpu.memory_space<vmem>>, vector<1x16x128xbf16>
    %202 = vector.shape_cast %201 : vector<1x16x128xbf16> to vector<16x128xbf16>
    %203 = arith.extf %202 : vector<16x128xbf16> to vector<16x128xf32>
    %204 = arith.select %6, %106, %4 : vector<16x128xi1>, vector<16x128xf32>
    %205 = math.absf %203 : vector<16x128xf32>
    %cst_75 = arith.constant 0.000000e+00 : f32
    %206 = vector.broadcast %cst_75 : f32 to vector<16x128xf32>
    %207 = arith.subf %206, %205 : vector<16x128xf32>
    %208 = math.exp %207 : vector<16x128xf32>
    %cst_76 = arith.constant 0.000000e+00 : f32
    %209 = vector.broadcast %cst_76 : f32 to vector<16x128xf32>
    %210 = arith.maximumf %203, %209 : vector<16x128xf32>
    %211 = arith.mulf %203, %204 : vector<16x128xf32>
    %212 = arith.subf %210, %211 : vector<16x128xf32>
    %cst_77 = arith.constant 1.000000e+00 : f32
    %213 = vector.broadcast %cst_77 : f32 to vector<16x128xf32>
    %214 = arith.addf %213, %208 : vector<16x128xf32>
    %215 = math.log %214 : vector<16x128xf32>
    %216 = arith.addf %212, %215 : vector<16x128xf32>
    %cst_78 = arith.constant 1.000000e+00 : f32
    %217 = vector.broadcast %cst_78 : f32 to vector<16x128xf32>
    %218 = arith.addf %217, %208 : vector<16x128xf32>
    %219 = tpu.reciprocal %218 {approx = true} : vector<16x128xf32> -> vector<16x128xf32>
    %cst_79 = arith.constant 0.000000e+00 : f32
    %220 = vector.broadcast %cst_79 : f32 to vector<16x128xf32>
    %221 = arith.cmpf oge, %203, %220 : vector<16x128xf32>
    %222 = arith.mulf %208, %219 : vector<16x128xf32>
    %223 = arith.select %221, %219, %222 : vector<16x128xi1>, vector<16x128xf32>
    %224 = arith.mulf %204, %223 : vector<16x128xf32>
    %cst_80 = arith.constant 1.000000e+00 : f32
    %225 = vector.broadcast %cst_80 : f32 to vector<16x128xf32>
    %226 = arith.subf %225, %204 : vector<16x128xf32>
    %cst_81 = arith.constant 1.000000e+00 : f32
    %227 = vector.broadcast %cst_81 : f32 to vector<16x128xf32>
    %228 = arith.subf %227, %223 : vector<16x128xf32>
    %229 = arith.mulf %226, %228 : vector<16x128xf32>
    %230 = arith.addf %224, %229 : vector<16x128xf32>
    %cst_82 = arith.constant 2.500000e-01 : f32
    %231 = vector.broadcast %cst_82 : f32 to vector<16x128xf32>
    %232 = arith.mulf %204, %231 : vector<16x128xf32>
    %cst_83 = arith.constant 1.000000e+00 : f32
    %233 = vector.broadcast %cst_83 : f32 to vector<16x128xf32>
    %234 = arith.subf %233, %204 : vector<16x128xf32>
    %cst_84 = arith.constant 7.500000e-01 : f32
    %235 = vector.broadcast %cst_84 : f32 to vector<16x128xf32>
    %236 = arith.mulf %234, %235 : vector<16x128xf32>
    %237 = arith.addf %232, %236 : vector<16x128xf32>
    %cst_85 = arith.constant 1.000000e+00 : f32
    %238 = vector.broadcast %cst_85 : f32 to vector<16x128xf32>
    %239 = arith.subf %238, %230 : vector<16x128xf32>
    %c0_86 = arith.constant 0 : index
    %c0_87 = arith.constant 0 : index
    %c0_88 = arith.constant 0 : index
    %240 = vector.load %arg5[%c0_86, %c0_87, %c0_88] : memref<4x8x128xf32, #tpu.memory_space<vmem>>, vector<1x8x128xf32>
    %241 = vector.shape_cast %240 : vector<1x8x128xf32> to vector<8x128xf32>
    %242 = arith.mulf %216, %237 : vector<16x128xf32>
    %243 = arith.mulf %239, %239 : vector<16x128xf32>
    %244 = arith.mulf %242, %243 : vector<16x128xf32>
    %245 = vector.shape_cast %244 : vector<16x128xf32> to vector<2x8x128xf32>
    %cst_89 = arith.constant dense<0.000000e+00> : vector<8x128xf32>
    %246 = vector.multi_reduction <add>, %245, %cst_89 [0] : vector<2x8x128xf32> to vector<8x128xf32>
    %247 = arith.addf %241, %246 : vector<8x128xf32>
    %c0_90 = arith.constant 0 : index
    %c0_91 = arith.constant 0 : index
    %c0_92 = arith.constant 0 : index
    %248 = vector.load %arg5[%c0_90, %c0_91, %c0_92] : memref<4x8x128xf32, #tpu.memory_space<vmem>>, vector<1x8x128xf32>
    %249 = vector.shape_cast %248 : vector<1x8x128xf32> to vector<8x128xf32>
    %250 = vector.shape_cast %247 : vector<8x128xf32> to vector<1x8x128xf32>
    tpu.vector_store %arg5[%c0_90, %c0_91, %c0_92], %250 {strides = array<i32>} : memref<4x8x128xf32, #tpu.memory_space<vmem>>, vector<1x8x128xf32>,
    %c5 = arith.constant 5 : index
    %c0_93 = arith.constant 0 : index
    %c0_94 = arith.constant 0 : index
    %251 = vector.load %arg2[%c5, %c0_93, %c0_94] : memref<12x16x128xbf16, #tpu.memory_space<vmem>>, vector<7x16x128xbf16>
    %252 = arith.extf %251 : vector<7x16x128xbf16> to vector<7x16x128xf32>
    %c5_95 = arith.constant 5 : index
    %c0_96 = arith.constant 0 : index
    %c0_97 = arith.constant 0 : index
    %253 = vector.load %arg3[%c5_95, %c0_96, %c0_97] : memref<6x16x128xf32, #tpu.memory_space<vmem>>, vector<1x16x128xf32>
    %254 = vector.shape_cast %253 : vector<1x16x128xf32> to vector<16x128xf32>
    %255 = arith.fptosi %254 : vector<16x128xf32> to vector<16x128xi32>
    %256 = tpu.iota {dimensions = array<i32: 0>} : vector<7x16x128xi32>
    %257 = vector.shape_cast %255 : vector<16x128xi32> to vector<1x16x128xi32>
    %258 = vector.broadcast %257 : vector<1x16x128xi32> to vector<7x16x128xi32>
    %259 = arith.cmpi eq, %256, %258 : vector<7x16x128xi32>
    %260 = arith.extui %259 : vector<7x16x128xi1> to vector<7x16x128xi32>
    %261 = arith.sitofp %260 : vector<7x16x128xi32> to vector<7x16x128xf32>
    %cst_98 = arith.constant dense<0xFF800000> : vector<16x128xf32>
    %262 = vector.multi_reduction <maximumf>, %252, %cst_98 [0] : vector<7x16x128xf32> to vector<16x128xf32>
    %263 = vector.shape_cast %262 : vector<16x128xf32> to vector<1x16x128xf32>
    %264 = vector.broadcast %263 : vector<1x16x128xf32> to vector<7x16x128xf32>
    %265 = arith.subf %252, %264 : vector<7x16x128xf32>
    %266 = math.exp %265 : vector<7x16x128xf32>
    %cst_99 = arith.constant dense<0.000000e+00> : vector<16x128xf32>
    %267 = vector.multi_reduction <add>, %266, %cst_99 [0] : vector<7x16x128xf32> to vector<16x128xf32>
    %268 = math.log %267 : vector<16x128xf32>
    %269 = arith.addf %268, %262 : vector<16x128xf32>
    %270 = arith.mulf %261, %252 : vector<7x16x128xf32>
    %cst_100 = arith.constant dense<0.000000e+00> : vector<16x128xf32>
    %271 = vector.multi_reduction <add>, %270, %cst_100 [0] : vector<7x16x128xf32> to vector<16x128xf32>
    %c2_101 = arith.constant 2 : index
    %c0_102 = arith.constant 0 : index
    %c0_103 = arith.constant 0 : index
    %272 = vector.load %arg5[%c2_101, %c0_102, %c0_103] : memref<4x8x128xf32, #tpu.memory_space<vmem>>, vector<1x8x128xf32>
    %273 = vector.shape_cast %272 : vector<1x8x128xf32> to vector<8x128xf32>
    %274 = arith.subf %269, %271 : vector<16x128xf32>
    %cst_104 = arith.constant 0.000000e+00 : f32
    %275 = vector.broadcast %cst_104 : f32 to vector<16x128xf32>
    %276 = arith.select %6, %274, %275 : vector<16x128xi1>, vector<16x128xf32>
    %277 = vector.shape_cast %276 : vector<16x128xf32> to vector<2x8x128xf32>
    %cst_105 = arith.constant dense<0.000000e+00> : vector<8x128xf32>
    %278 = vector.multi_reduction <add>, %277, %cst_105 [0] : vector<2x8x128xf32> to vector<8x128xf32>
    %279 = arith.addf %273, %278 : vector<8x128xf32>
    %c2_106 = arith.constant 2 : index
    %c0_107 = arith.constant 0 : index
    %c0_108 = arith.constant 0 : index
    %280 = vector.load %arg5[%c2_106, %c0_107, %c0_108] : memref<4x8x128xf32, #tpu.memory_space<vmem>>, vector<1x8x128xf32>
    %281 = vector.shape_cast %280 : vector<1x8x128xf32> to vector<8x128xf32>
    %282 = vector.shape_cast %279 : vector<8x128xf32> to vector<1x8x128xf32>
    tpu.vector_store %arg5[%c2_106, %c0_107, %c0_108], %282 {strides = array<i32>} : memref<4x8x128xf32, #tpu.memory_space<vmem>>, vector<1x8x128xf32>,
    %c0_i32_109 = arith.constant 0 : i32
    %283 = arith.cmpi eq, %arg1, %c0_i32_109 : i32
    %284 = arith.extui %283 : i1 to i32
    %c0_i32_110 = arith.constant 0 : i32
    %285 = arith.cmpi ne, %284, %c0_i32_110 : i32
    scf.if %285 {
      %c0_111 = arith.constant 0 : index
      %c0_112 = arith.constant 0 : index
      %c0_113 = arith.constant 0 : index
      %286 = vector.load %arg5[%c0_111, %c0_112, %c0_113] : memref<4x8x128xf32, #tpu.memory_space<vmem>>, vector<4x8x128xf32>
      %c0_114 = arith.constant 0 : index
      %c0_115 = arith.constant 0 : index
      %c0_116 = arith.constant 0 : index
      %c0_117 = arith.constant 0 : index
      %287 = vector.load %arg4[%c0_114, %c0_115, %c0_116, %c0_117] : memref<1x4x8x128xf32, #tpu.memory_space<vmem>>, vector<1x4x8x128xf32>
      %288 = vector.shape_cast %287 : vector<1x4x8x128xf32> to vector<4x8x128xf32>
      %289 = vector.shape_cast %286 : vector<4x8x128xf32> to vector<1x4x8x128xf32>
      tpu.vector_store %arg4[%c0_114, %c0_115, %c0_116, %c0_117], %289 {strides = array<i32>} : memref<1x4x8x128xf32, #tpu.memory_space<vmem>>, vector<1x4x8x128xf32>,
    } else {
    }
    return
  }
  func.func @transform_0(%arg0: i32, %arg1: i32) -> (i32, i32, i32) {
    %c1_i32 = arith.constant 1 : i32
    %0 = arith.muli %arg0, %c1_i32 : i32
    %1 = arith.addi %0, %arg1 : i32
    %c0_i32 = arith.constant 0 : i32
    %c0_i32_0 = arith.constant 0 : i32
    %c0_i32_1 = arith.constant 0 : i32
    return %c0_i32, %1, %c0_i32_0 : i32, i32, i32
  }
  func.func @transform_1(%arg0: i32, %arg1: i32) -> (i32, i32, i32) {
    %c1_i32 = arith.constant 1 : i32
    %0 = arith.muli %arg0, %c1_i32 : i32
    %1 = arith.addi %0, %arg1 : i32
    %c0_i32 = arith.constant 0 : i32
    %c0_i32_0 = arith.constant 0 : i32
    %c0_i32_1 = arith.constant 0 : i32
    return %c0_i32, %1, %c0_i32_0 : i32, i32, i32
  }
  func.func @transform_2(%arg0: i32, %arg1: i32) -> (i32, i32, i32, i32) {
    %c0_i32 = arith.constant 0 : i32
    %c0_i32_0 = arith.constant 0 : i32
    %c0_i32_1 = arith.constant 0 : i32
    %c0_i32_2 = arith.constant 0 : i32
    return %arg0, %c0_i32, %c0_i32_0, %c0_i32_1 : i32, i32, i32, i32
  }
}

</mosaic_0001>

<bundles_post_ra>
// kernel: pallas_yolo_loss.1
= control target key start
LH: loop header
LB: loop body
LE: loop exit
PB: predicated region body
PF: predicated region fallthrough
CT: control target
= control target key end

     0   :  { %s1406_s0 = inlined_call_operand.vmem [shape: bf16[12,16,128], index: 0, kind: input, shape index: {}]   ;;  %s1407_s1 = inlined_call_operand.vmem [shape: f32[6,16,128], index: 1, kind: input, shape index: {}]   ;;  %s1408_s2 = inlined_call_operand.vmem [shape: f32[1,4,8,128], index: 2, kind: output, shape index: {}]  }
   0x1   :  { %v842_v0 = vld [vmem:[%s1406_s0 + $0x8] sm:$0xff]   ;;  %v847_v1 = vld [vmem:[%s1406_s0 + $0x10] sm:$0xff]   ;;  %v727_v14 = vld [vmem:[%s1406_s0 + $0x18] sm:$0xff]  }
   0x2   :  { %v679_v2 = vunpack.c.l.bf16 %v842_v0  ;;  %v680_v3 = vunpack.c.h.bf16 %v842_v0  ;;  %v683_v4 = vunpack.c.l.bf16 %v847_v1  ;;  %v684_v5 = vunpack.c.h.bf16 %v847_v1  ;;  %v728_v19 = vld [vmem:[%s1406_s0 + $0x20] sm:$0xff]   ;;  %v870_v34 = vld [vmem:[%s1407_s1 + $0x30] sm:$0xff]  ;;  %v875_v35 = vld [vmem:[%s1407_s1 + $0x38] sm:$0xff] }
   0x3   :  { %v687_v20 = vunpack.c.l.bf16 %v727_v14  ;;  %v688_v21 = vunpack.c.h.bf16 %v727_v14  ;;  %v691_v22 = vunpack.c.l.bf16 %v728_v19  ;;  %v692_v23 = vunpack.c.h.bf16 %v728_v19  ;;  %v635_v37 = vld [vmem:[%s1407_s1 + $0x40] sm:$0xff]  ;;  %v636_v38 = vld [vmem:[%s1407_s1 + $0x48] sm:$0xff]  ;;  %v629_v44 = vld [vmem:[%s1407_s1 + $0x10] sm:$0xff] }
   0x4   :  { %v89_v6 = vand.u32 2147483647, %v679_v2  ;;  %v90_v7 = vand.u32 2147483647, %v680_v3  ;;  %v97_v8 = vand.u32 2147483647, %v683_v4  ;;  %v900_v51 = vmul.f32 %v635_v37, %v870_v34 }
   0x5   :  { %v98_v9 = vand.u32 2147483647, %v684_v5  ;;  %v134_v24 = vmul.f32 1.442695, %v687_v20  ;;  %v136_v25 = vmul.f32 1.442695, %v688_v21  ;;  %v903_v52 = vmul.f32 %v636_v38, %v875_v35 }
   0x6   :  { %v91_v10 = vsub.f32 0.0, %v89_v6  ;;  %v92_v11 = vsub.f32 0.0, %v90_v7  ;;  %v99_v12 = vsub.f32 0.0, %v97_v8  ;;  %v143_v27 = vmul.f32 1.442695, %v691_v22  ;;  %v630_v45 = vld [vmem:[%s1407_s1 + $0x18] sm:$0xff] }
   0x7   :  { %v100_v13 = vsub.f32 0.0, %v98_v9  ;;  %v145_v30 = vmul.f32 1.442695, %v692_v23  ;;  %v159_v42 = vmul.f32 0.5, %v870_v34  ;;  %v160_v43 = vmul.f32 0.5, %v875_v35  ;;  %v631_v49 = vld [vmem:[%s1407_s1 + $0x20] sm:$0xff] }
   0x8   :  { %v93_v15 = vmul.f32 1.442695, %v91_v10  ;;  %v95_v16 = vmul.f32 1.442695, %v92_v11  ;;  %v101_v17 = vmul.f32 1.442695, %v99_v12 }
   0x9   :  { %v103_v18 = vmul.f32 1.442695, %v100_v13  ;;  %v165_v46 = vmul.f32 0.5, %v635_v37  ;;  %v166_v47 = vmul.f32 0.5, %v636_v38  ;;  %v632_v50 = vld [vmem:[%s1407_s1 + $0x28] sm:$0xff]  ;;  %vm907_vm0 = vcmp.ge.f32.partialorder %v679_v2, 0.0 }
   0xa   :  { %747 = vpow2.f32 %v93_v15  ;;  %vm911_vm1 = vcmp.ge.f32.partialorder %v680_v3, 0.0  ;;  %vm915_vm2 = vcmp.ge.f32.partialorder %v683_v4, 0.0  ;;  %vm921_vm3 = vcmp.ge.f32.partialorder %v684_v5, 0.0 }
   0xb   :  { %749 = vpow2.f32 %v95_v16  ;;  %v925_v59 = vsub.f32 %v629_v44, %v159_v42  ;;  %v927_v60 = vsub.f32 %v630_v45, %v160_v43  ;;  %v929_v61 = vadd.f32 %v629_v44, %v159_v42 }
   0xc   :  { %751 = vpow2.f32 %v101_v17  ;;  %v931_v63 = vadd.f32 %v630_v45, %v160_v43  ;;  %v933_v0 = vsub.f32 %v631_v49, %v165_v46  ;;  %v935_v2 = vsub.f32 %v632_v50, %v166_v47 }
   0xd   :  { %753 = vpow2.f32 %v103_v18  ;;  %v937_v3 = vadd.f32 %v631_v49, %v165_v46  ;;  %v939_v1 = vadd.f32 %v632_v50, %v166_v47  ;;  %v195_v4 = vand.u32 2147483647, %v900_v51 }
   0xe   :  { %755 = vpow2.f32 %v134_v24  ;;  %v196_v5 = vand.u32 2147483647, %v903_v52  ;;  %v943_v6 = vadd.f32 1e-07, %v635_v37  ;;  %v204_v11 = vadd.f32 1e-07, %v636_v38 }
   0xf   :  { %757 = vpow2.f32 %v136_v25  ;;  %v243_v19 = vadd.f32 %v929_v61, %v925_v59  ;;  %v244_v20 = vadd.f32 %v931_v63, %v927_v60  ;;  %v249_v23 = vadd.f32 %v937_v3, %v933_v0 }
  0x10   :  { %v861_v26 = vpop.eup %747  ;;  %759 = vpow2.f32 %v143_v27  ;;  %v250_v24 = vadd.f32 %v939_v1, %v935_v2 }
  0x11   :  { %v863_v28 = vpop.eup %749  ;;  %v105_v29 = vadd.f32 1.0, %v861_v26  ;;  %761 = vpow2.f32 %v145_v30 }
  0x12   :  { %v752_v31 = vpop.eup %751  ;;  %v106_v32 = vadd.f32 1.0, %v863_v28 }
  0x13   :  { %v754_v33 = vpop.eup %753  ;;  %v107_v36 = vadd.f32 1.0, %v752_v31 }
  0x14   :  { %v108_v39 = vadd.f32 1.0, %v754_v33  ;;  %v891_v48 = vpop.eup %755 }
  0x15   :  { %v109_v40 = vmul.f32 %v107_v36, %v105_v29  ;;  %v905_v53 = vpop.eup %757  ;;  %v147_v8 = vmul.f32 0.5, %v891_v48 }
  0x16   :  { %v110_v41 = vmul.f32 %v108_v39, %v106_v32  ;;  %v760_v57 = vpop.eup %759  ;;  %v148_v9 = vmul.f32 0.5, %v905_v53 }
  0x17   :  { %763 = vrcp.f32 %v109_v40  ;;  %v762_v62 = vpop.eup %761  ;;  %v153_v10 = vmul.f32 0.5, %v760_v57  ;;  %v189_v16 = vmul.f32 %v760_v57, %v891_v48  ;;  %v205_v30 = vadd.f32 1e-07, %v760_v57 }
  0x18   :  { %765 = vrcp.f32 %v110_v41  ;;  %v154_v15 = vmul.f32 0.5, %v762_v62 }
  0x1d   :  { %v764_v7 = vpop.eup %763 }
  0x1e   :  { %v766_v12 = vpop.eup %765  ;;  %v113_v13 = vmul.f32 %v764_v7, %v107_v36  ;;  %v115_v14 = vmul.f32 %v764_v7, %v105_v29  ;;  %v190_v29 = vmul.f32 %v762_v62, %v905_v53 }
  0x1f   :  { %v114_v17 = vmul.f32 %v766_v12, %v108_v39  ;;  %v116_v18 = vmul.f32 %v766_v12, %v106_v32 }
  0x20   :  { %v119_v21 = vmul.f32 %v861_v26, %v113_v13  ;;  %v125_v22 = vmul.f32 %v752_v31, %v115_v14  ;;  %v191_v26 = vand.u32 2147483647, %v189_v16  ;;  %v206_v31 = vadd.f32 1e-07, %v762_v62 }
  0x21   :  { %v120_v25 = vmul.f32 %v863_v28, %v114_v17  ;;  %v126_v27 = vmul.f32 %v754_v33, %v116_v18  ;;  %v192_v56 = vand.u32 2147483647, %v190_v29 }
  0x22   :  { %v121_v32 = vsel %vm907_vm0, %v113_v13, %v119_v21  ;;  %v127_v36 = vsel %vm915_vm2, %v115_v14, %v125_v22  ;;  %v208_v12 = vmul.f32 %v206_v31, %v204_v11  ;;  %v210_v13 = vmul.f32 %v905_v53, %v875_v35 }
  0x23   :  { %v122_v37 = vsel %vm911_vm1, %v114_v17, %v120_v25  ;;  %v128_v38 = vsel %vm921_vm3, %v116_v18, %v126_v27  ;;  %v967_v39 = vsub.f32 %v121_v32, %v147_v8  ;;  %v969_v28 = vadd.f32 %v147_v8, %v121_v32 }
  0x24   :  { %v971_v33 = vsub.f32 %v122_v37, %v148_v9  ;;  %v973_v40 = vadd.f32 %v148_v9, %v122_v37  ;;  %v975_v41 = vsub.f32 %v127_v36, %v153_v10  ;;  %v977_v42 = vsub.f32 %v128_v38, %v154_v15 }
  0x25   :  { %v979_v43 = vadd.f32 %v153_v10, %v127_v36  ;;  %v981_v44 = vadd.f32 %v154_v15, %v128_v38  ;;  %v171_v45 = vmin.f32 %v969_v28, %v929_v61  ;;  %v173_v46 = vmax.f32 %v967_v39, %v925_v59 }
  0x26   :  { %v172_v47 = vmin.f32 %v973_v40, %v931_v63  ;;  %v174_v49 = vmax.f32 %v971_v33, %v927_v60  ;;  %v181_v50 = vmax.f32 %v975_v41, %v933_v0  ;;  %v182_v51 = vmax.f32 %v977_v42, %v935_v2 }
  0x27   :  { %v175_v52 = vsub.f32 %v171_v45, %v173_v46  ;;  %v179_v54 = vmin.f32 %v979_v43, %v937_v3  ;;  %v180_v55 = vmin.f32 %v981_v44, %v939_v1  ;;  %v209_v8 = vmul.f32 %v891_v48, %v870_v34 }
  0x28   :  { %v176_v57 = vsub.f32 %v172_v47, %v174_v49  ;;  %v207_v10 = vmul.f32 %v205_v30, %v943_v6  ;;  %v197_v16 = vadd.f32 %v195_v4, %v191_v26  ;;  %v198_v17 = vadd.f32 %v196_v5, %v192_v56 }
  0x29   :  { %v177_v58 = vmax.f32 %v175_v52, 0.0  ;;  %v183_v62 = vsub.f32 %v179_v54, %v181_v50  ;;  %v184_v7 = vsub.f32 %v180_v55, %v182_v51  ;;  %v245_v18 = vsub.f32 %v243_v19, %v967_v39 }
  0x2a   :  { %v178_v9 = vmax.f32 %v176_v57, 0.0  ;;  %v246_v21 = vsub.f32 %v244_v20, %v971_v33  ;;  %v263_v22 = vmul.f32 %v870_v34, %v205_v30  ;;  %v264_v25 = vmul.f32 %v875_v35, %v206_v31  ;;  %v733_v57 = vld [vmem:[%s1406_s0 + $0x48] sm:$0xff]  }
  0x2b   :  { %v185_v14 = vmax.f32 %v183_v62, 0.0  ;;  %v186_v15 = vmax.f32 %v184_v7, 0.0  ;;  %v265_v32 = vmul.f32 %v891_v48, %v943_v6  ;;  %v266_v36 = vmul.f32 %v905_v53, %v204_v11 }
  0x2c   :  { %v247_v4 = vsub.f32 %v245_v18, %v969_v28  ;;  %v248_v5 = vsub.f32 %v246_v21, %v973_v40  ;;  %v251_v19 = vsub.f32 %v249_v23, %v975_v41  ;;  %v252_v20 = vsub.f32 %v250_v24, %v977_v42 }
  0x2d   :  { %v1008_v27 = vmul.f32 %v185_v14, %v177_v58  ;;  %v1010_v29 = vmul.f32 %v186_v15, %v178_v9  ;;  %v1021_v30 = vadd.f32 %v209_v8, %v207_v10  ;;  %v1023_v26 = vadd.f32 %v210_v13, %v208_v12  ;;  %v734_v12 = vld [vmem:[%s1406_s0 + $0x50] sm:$0xff]   ;;  %v735_v13 = vld [vmem:[%s1406_s0 + $0x58] sm:$0xff]  }
  0x2e   :  { %v253_v48 = vsub.f32 %v251_v19, %v979_v43  ;;  %v254_v53 = vsub.f32 %v252_v20, %v981_v44  ;;  %v255_v6 = vmul.f32 %v247_v4, %v247_v4  ;;  %v256_v11 = vmul.f32 %v248_v5, %v248_v5 }
  0x2f   :  { %v199_v34 = vsub.f32 %v197_v16, %v1008_v27  ;;  %v200_v35 = vsub.f32 %v198_v17, %v1010_v29  ;;  %v267_v38 = vsub.f32 %v263_v22, %v265_v32  ;;  %v268_v23 = vsub.f32 %v264_v25, %v266_v36 }
  0x30   :  { %v223_v24 = vmax.f32 %v969_v28, %v929_v61  ;;  %v225_v45 = vmin.f32 %v967_v39, %v925_v59  ;;  %v257_v46 = vmul.f32 %v253_v48, %v253_v48  ;;  %v258_v47 = vmul.f32 %v254_v53, %v254_v53  ;;  %v694_v53 = vld [vmem:[%s1406_s0] sm:$0xff]  }
  0x31   :  { %v201_v31 = vadd.f32 1e-06, %v199_v34  ;;  %v202_v37 = vadd.f32 1e-06, %v200_v35  ;;  %v224_v51 = vmax.f32 %v973_v40, %v931_v63  ;;  %v226_v52 = vmin.f32 %v971_v33, %v927_v60 }
  0x32   :  { %v229_v54 = vmax.f32 %v979_v43, %v937_v3  ;;  %v231_v61 = vmin.f32 %v975_v41, %v933_v0  ;;  %v1041_v28 = vadd.f32 %v257_v46, %v255_v6  ;;  %v1043_v59 = vadd.f32 %v258_v47, %v256_v11  ;;  %v729_v3 = vld [vmem:[%s1406_s0 + $0x28] sm:$0xff]   ;;  %v731_v0 = vld [vmem:[%s1406_s0 + $0x38] sm:$0xff]  }
  0x33   :  { %v213_v49 = vmul.f32 %v1021_v30, %v201_v31  ;;  %v214_v50 = vmul.f32 %v1023_v26, %v202_v37  ;;  %v269_v39 = vand.u32 2147483647, %v267_v38  ;;  %v227_v55 = vsub.f32 %v223_v24, %v225_v45 }
  0x34   :  { %v230_v63 = vmax.f32 %v981_v44, %v939_v1  ;;  %v232_v60 = vmin.f32 %v977_v42, %v935_v2  ;;  %v1055_v33 = vunpack.c.l.bf16 %v729_v3  ;;  %v1057_v40 = vunpack.c.h.bf16 %v729_v3  ;;  %v730_v2 = vld [vmem:[%s1406_s0 + $0x30] sm:$0xff]   ;;  %v732_v42 = vld [vmem:[%s1406_s0 + $0x40] sm:$0xff]  }
  0x35   :  { %767 = vrcp.f32 %v213_v49  ;;  %v1059_v41 = vunpack.c.l.bf16 %v731_v0  ;;  %v1061_v43 = vunpack.c.h.bf16 %v731_v0  ;;  %v228_v1 = vsub.f32 %v224_v51, %v226_v52 }
  0x36   :  { %769 = vrcp.f32 %v214_v50  ;;  %v233_v44 = vsub.f32 %v229_v54, %v231_v61  ;;  %v270_v56 = vand.u32 2147483647, %v268_v23  ;;  %v1072_v58 = vunpack.c.l.bf16 %v730_v2 }
  0x37   :  { %1425 = vst [vmem:[#allocation3_spill] sm:$0xff] %v1059_v41  ;;  %v1074_v62 = vunpack.c.h.bf16 %v730_v2  ;;  %v1076_v7 = vunpack.c.l.bf16 %v732_v42  ;;  %v1078_v8 = vunpack.c.h.bf16 %v732_v42  ;;  %v1080_v9 = vunpack.c.l.bf16 %v733_v57 }
  0x38   :  { %1426 = vst [vmem:[#allocation4_spill] sm:$0xff] %v1061_v43  ;;  %v1082_v10 = vunpack.c.h.bf16 %v733_v57  ;;  %v495_v14 = vmax.f32 %v1055_v33, %v1059_v41  ;;  %v501_v15 = vmax.f32 %v1057_v40, %v1061_v43  ;;  %v234_v17 = vsub.f32 %v230_v63, %v232_v60 }
  0x39   :  { %1427 = vst [vmem:[#allocation5_spill] sm:$0xff] %v1072_v58  ;;  %v235_v18 = vmul.f32 %v227_v55, %v227_v55  ;;  %v1094_v21 = vunpack.c.l.bf16 %v734_v12  ;;  %v1096_v22 = vunpack.c.l.bf16 %v735_v13  ;;  %v1098_v36 = vunpack.c.h.bf16 %v734_v12 }
  0x3a   :  { %1428 = vst [vmem:[#allocation6_spill] sm:$0xff] %v1074_v62  ;;  %v496_v4 = vmax.f32 %v1072_v58, %v1076_v7  ;;  %v497_v5 = vmax.f32 %v495_v14, %v1080_v9  ;;  %v237_v20 = vmul.f32 %v233_v44, %v233_v44  ;;  %v1103_v34 = vunpack.c.h.bf16 %v735_v13 }
  0x3b   :  { %1429 = vst [vmem:[#allocation7_spill] sm:$0xff] %v1076_v7  ;;  %v768_v16 = vpop.eup %767  ;;  %v502_v35 = vmax.f32 %v1074_v62, %v1078_v8  ;;  %v1119_v23 = vunpack.c.h.bf16 %v694_v53  ;;  %v236_v24 = vmul.f32 %v228_v1, %v228_v1  ;;  %v238_v45 = vmul.f32 %v234_v17, %v234_v17 }
  0x3c   :  { %1430 = vst [vmem:[#allocation8_spill] sm:$0xff] %v1078_v8  ;;  %v770_v25 = vpop.eup %769  ;;  %v221_v32 = vmul.f32 %v768_v16, %v201_v31  ;;  %v498_v6 = vmax.f32 %v496_v4, %v1094_v21  ;;  %v499_v11 = vmax.f32 %v497_v5, %v1096_v22  ;;  %v503_v31 = vmax.f32 %v501_v15, %v1082_v10  ;;  %v1178_v4 = vld [vmem:[%s1407_s1] sm:$0xff] }
  0x3d   :  { %1431 = vst [vmem:[#allocation9_spill] sm:$0xff] %v1080_v9  ;;  %v222_v19 = vmul.f32 %v770_v25, %v202_v37  ;;  %v1117_v37 = vunpack.c.l.bf16 %v694_v53  ;;  %v504_v47 = vmax.f32 %v502_v35, %v1098_v36  ;;  %v362_v51 = vand.u32 2147483647, %v1119_v23 }
  0x3e   :  { %1432 = vst [vmem:[#allocation10_spill] sm:$0xff] %v1082_v10  ;;  %v1107_v48 = vmul.f32 %v269_v39, %v221_v32  ;;  %v1126_v52 = vmax.f32 %v499_v11, %v498_v6  ;;  %v239_v54 = vadd.f32 %v237_v20, %v235_v18  ;;  %v505_v61 = vmax.f32 %v503_v31, %v1103_v34 }
  0x3f   :  { %v1115_v38 = vmul.f32 %v270_v56, %v222_v19  ;;  %v361_v50 = vand.u32 2147483647, %v1117_v37  ;;  %v364_v55 = vsub.f32 0.0, %v362_v51  ;;  %v240_v63 = vadd.f32 %v238_v45, %v236_v24  ;;  %v661_v45 = vld [vmem:[%s1407_s1 + $0x50] sm:$0xff] }
  0x40   :  { %v275_v46 = vmax.f32 %v1107_v48, 1.0  ;;  %v1129_v60 = vmax.f32 %v505_v61, %v504_v47  ;;  %v507_v1 = vsub.f32 %v1055_v33, %v1126_v52  ;;  %v217_v44 = vmul.f32 %v768_v16, %v1021_v30 }
  0x41   :  { %v276_v49 = vmax.f32 %v1115_v38, 1.0  ;;  %v363_v39 = vsub.f32 0.0, %v361_v50  ;;  %v367_v0 = vmul.f32 1.442695, %v364_v55  ;;  %v218_v56 = vmul.f32 %v770_v25, %v1023_v26 }
  0x42   :  { %771 = vrcp.f32 %v275_v46  ;;  %v1135_v2 = vadd.f32 1e-07, %v239_v54  ;;  %vm273_vm4 = vcmp.gt.f32.partialorder %v1107_v48, 1.0  ;;  %vm274_vm5 = vcmp.gt.f32.partialorder %v1115_v38, 1.0 }
  0x43   :  { %773 = vrcp.f32 %v276_v49  ;;  %v365_v3 = vmul.f32 1.442695, %v363_v39  ;;  %v508_v42 = vsub.f32 %v1057_v40, %v1129_v60  ;;  %v509_v57 = vsub.f32 %v1072_v58, %v1126_v52 }
  0x44   :  { %v1143_v13 = vadd.f32 1e-07, %v240_v63  ;;  %v1146_v30 = vmul.f32 0.25, %v1041_v28  ;;  %v511_v26 = vsub.f32 %v1059_v41, %v1126_v52  ;;  %v1151_v15 = vmul.f32 0.25, %v1043_v59 }
  0x45   :  { %775 = vpow2.f32 %v365_v3  ;;  %v510_v17 = vsub.f32 %v1074_v62, %v1129_v60  ;;  %v521_v18 = vmul.f32 1.442695, %v507_v1  ;;  %v1161_v28 = vmul.f32 %v217_v44, %v1008_v27  ;;  %v1183_v27 = vld [vmem:[%s1407_s1 + $0x8] sm:$0xff]  ;;  %v662_v44 = vld [vmem:[%s1407_s1 + $0x58] sm:$0xff] }
  0x46   :  { %1433 = vst [vmem:[#allocation11_spill] sm:$0xff] %v1146_v30  ;;  %777 = vpow2.f32 %v367_v0  ;;  %v1164_v25 = vmul.f32 %v218_v56, %v1010_v29  ;;  %v513_v5 = vsub.f32 %v1076_v7, %v1126_v52  ;;  %v523_v19 = vmul.f32 1.442695, %v508_v42 }
  0x47   :  { %1434 = vst [vmem:[#allocation12_spill] sm:$0xff] %v1151_v15  ;;  %v525_v20 = vmul.f32 1.442695, %v509_v57  ;;  %v512_v53 = vsub.f32 %v1061_v43, %v1129_v60  ;;  %v514_v6 = vsub.f32 %v1078_v8, %v1129_v60  ;;  %v529_v11 = vmul.f32 1.442695, %v511_v26 }
  0x48   :  { %v772_v12 = vpop.eup %771  ;;  %v515_v46 = vsub.f32 %v1080_v9, %v1126_v52  ;;  %779 = vpow2.f32 %v521_v18  ;;  %v527_v47 = vmul.f32 1.442695, %v510_v17  ;;  %vm65_vm6 = vcmp.eq.f32.partialorder %v1178_v4, 1.0 }
  0x49   :  { %v774_v14 = vpop.eup %773  ;;  %v1156_v16 = vsel %vm273_vm4, %v772_v12, %v1107_v48  ;;  %vm66_vm7 = vcmp.eq.f32.partialorder %v1183_v27, 1.0  ;;  %v737_v54 = vceil.f32 %v661_v45  ;;  %v738_v61 = vfloor.f32 %v661_v45 }
  0x4a   :  { %v1169_v59 = vsel %vm274_vm5, %v774_v14, %v1115_v38  ;;  %v1173_v32 = vmul.f32 %v1156_v16, %v1156_v16  ;;  %vm736_vm8 = vcmp.lt.s32.totalorder %v661_v45, 0  ;;  %781 = vpow2.f32 %v523_v19 }
  0x4b   :  { %v1187_v29 = vmul.f32 %v1169_v59, %v1169_v59  ;;  %v776_v31 = vpop.eup %775  ;;  %v516_v3 = vsub.f32 %v1082_v10, %v1129_v60  ;;  %v1207_v0 = vmul.f32 1.442695, %v513_v5  ;;  %v531_v42 = vmul.f32 1.442695, %v512_v53 }
  0x4c   :  { %v283_v35 = vmul.f32 -0.0117212, %v1173_v32  ;;  %v778_v49 = vpop.eup %777  ;;  %v375_v51 = vadd.f32 1.0, %v776_v31  ;;  %v739_v12 = vsel %vm736_vm8, %v737_v54, %v738_v61  ;;  %v1221_v5 = vmul.f32 1.442695, %v514_v6 }
  0x4d   :  { %v284_v24 = vmul.f32 -0.0117212, %v1187_v29  ;;  %v376_v55 = vadd.f32 1.0, %v778_v49  ;;  %vm741_vm9 = vcmp.lt.s32.totalorder %v662_v44, 0  ;;  %v742_v45 = vceil.f32 %v662_v44 }
  0x4e   :  { %v285_v50 = vadd.f32 0.05265332, %v283_v35  ;;  %783 = vrcp.f32 %v375_v51  ;;  %v1217_v14 = vpop.eup %779  ;;  %v1231_v6 = vmul.f32 1.442695, %v515_v46  ;;  %vm385_vm10 = vcmp.ge.f32.partialorder %v1117_v37, 0.0 }
  0x4f   :  { %v286_v39 = vadd.f32 0.05265332, %v284_v24  ;;  %785 = vrcp.f32 %v376_v55  ;;  %v1229_v24 = vcvt.f32.s32 %v739_v12  ;;  %vm386_vm11 = vcmp.ge.f32.partialorder %v1119_v23, 0.0 }
  0x50   :  { %v287_v63 = vmul.f32 %v285_v50, %v1173_v32  ;;  %787 = vpow2.f32 %v525_v20  ;;  %v1226_v53 = vpop.eup %781  ;;  %v743_v50 = vfloor.f32 %v662_v44  ;;  %v369_v15 = vmax.f32 %v1117_v37, 0.0 }
  0x51   :  { %v288_v1 = vmul.f32 %v286_v39, %v1187_v29  ;;  %789 = vpow2.f32 %v527_v47  ;;  %v1233_v47 = vmul.f32 1.442695, %v516_v3  ;;  %v359_v3 = vsel %vm65_vm6, %v1161_v28, %v1178_v4 }
  0x52   :  { %v289_v57 = vadd.f32 -0.11643287, %v287_v63  ;;  %791 = vpow2.f32 %v529_v11  ;;  %v370_v10 = vmax.f32 %v1119_v23, 0.0  ;;  %vm453_vm12 = vcmp.eq.s32.totalorder %v1229_v24, 0 }
  0x53   :  { %v290_v17 = vadd.f32 -0.11643287, %v288_v1  ;;  %793 = vpow2.f32 %v531_v42  ;;  %v401_v41 = vmul.f32 0.25, %v359_v3  ;;  %vm455_vm13 = vcmp.eq.s32.totalorder %v1229_v24, 1 }
  0x54   :  { %v291_v19 = vmul.f32 %v289_v57, %v1173_v32  ;;  %v784_v54 = vpop.eup %783  ;;  %795 = vlog2.f32 %v375_v51  ;;  %vm457_vm14 = vcmp.eq.s32.totalorder %v1229_v24, 2  ;;  %vm459_vm2 = vcmp.eq.s32.totalorder %v1229_v24, 3 }
  0x55   :  { %v292_v20 = vmul.f32 %v290_v17, %v1187_v29  ;;  %v786_v39 = vpop.eup %785  ;;  %v387_v1 = vmul.f32 %v784_v54, %v776_v31  ;;  %797 = vlog2.f32 %v376_v55  ;;  %v360_v31 = vsel %vm66_vm7, %v1164_v25, %v1183_v27 }
  0x56   :  { %v293_v61 = vadd.f32 0.19354346, %v291_v19  ;;  %v1235_v11 = vpop.eup %787  ;;  %v388_v51 = vmul.f32 %v786_v39, %v778_v49  ;;  %v393_v19 = vsub.f32 1.0, %v359_v3  ;;  %v394_v35 = vsub.f32 1.0, %v360_v31 }
  0x57   :  { %v294_v63 = vadd.f32 0.19354346, %v292_v20  ;;  %v1240_v12 = vpop.eup %789  ;;  %v389_v17 = vsel %vm385_vm10, %v784_v54, %v387_v1  ;;  %v744_v20 = vsel %vm741_vm9, %v742_v45, %v743_v50  ;;  %v371_v49 = vmul.f32 %v1117_v37, %v359_v3 }
  0x58   :  { %v295_v57 = vmul.f32 %v293_v61, %v1173_v32  ;;  %v1251_v55 = vpop.eup %791  ;;  %v395_v18 = vsub.f32 1.0, %v389_v17  ;;  %v372_v45 = vmul.f32 %v1119_v23, %v360_v31  ;;  %v391_v50 = vmul.f32 %v389_v17, %v359_v3 }
  0x59   :  { %v296_v46 = vmul.f32 %v294_v63, %v1187_v29  ;;  %v390_v63 = vsel %vm386_vm11, %v786_v39, %v388_v51  ;;  %v1254_v26 = vpop.eup %793  ;;  %v402_v17 = vmul.f32 0.25, %v360_v31  ;;  %799 = vpow2.f32 %v1207_v0 }
  0x5a   :  { %v297_v42 = vadd.f32 -0.33262348, %v295_v57  ;;  %v796_v54 = vpop.eup %795  ;;  %v392_v39 = vmul.f32 %v390_v63, %v360_v31  ;;  %v374_v30 = vsub.f32 %v370_v10, %v372_v45  ;;  %v397_v8 = vmul.f32 %v395_v18, %v393_v19 }
  0x5b   :  { %v298_v61 = vadd.f32 -0.33262348, %v296_v46  ;;  %v798_v1 = vpop.eup %797  ;;  %v373_v46 = vsub.f32 %v369_v15, %v371_v49  ;;  %v378_v51 = vmul.f32 0.6931472, %v796_v54  ;;  %v404_v15 = vmul.f32 0.75, %v394_v35 }
  0x5c   :  { %v299_v56 = vmul.f32 %v297_v42, %v1173_v32  ;;  %v396_v32 = vsub.f32 1.0, %v390_v63  ;;  %v380_v9 = vmul.f32 0.6931472, %v798_v1  ;;  %v399_v23 = vadd.f32 %v397_v8, %v391_v50 }
  0x5d   :  { %v300_v44 = vmul.f32 %v298_v61, %v1187_v29  ;;  %v381_v7 = vadd.f32 %v378_v51, %v373_v46  ;;  %v1265_v54 = vcvt.f32.s32 %v744_v20  ;;  %v406_v18 = vadd.f32 %v404_v15, %v402_v17 }
  0x5e   :  { %v301_v57 = vadd.f32 0.99997723, %v299_v56  ;;  %v398_v43 = vmul.f32 %v396_v32, %v394_v35  ;;  %v382_v61 = vadd.f32 %v380_v9, %v374_v30  ;;  %v403_v56 = vmul.f32 0.75, %v393_v19 }
  0x5f   :  { %v302_v42 = vadd.f32 0.99997723, %v300_v44  ;;  %v407_v63 = vsub.f32 1.0, %v399_v23  ;;  %v823_v30 = vmov 0.0   ;;  %vm454_vm15 = vcmp.eq.s32.totalorder %v1265_v54, 0 }
  0x60   :  { %v303_v37 = vmul.f32 %v301_v57, %v1156_v16  ;;  %v400_v58 = vadd.f32 %v398_v43, %v392_v39  ;;  %v405_v16 = vadd.f32 %v403_v56, %v401_v41  ;;  %v645_v43 = vsel %vm65_vm6, 1.0, %v823_v30 }
  0x61   :  { %v304_v29 = vmul.f32 %v302_v42, %v1169_v59  ;;  %v646_v59 = vsel %vm66_vm7, 1.0, %v823_v30  ;;  %v663_v38 = vsel %vm453_vm12, 1.0, %v823_v30  ;;  %v665_v44 = vsel %vm455_vm13, 1.0, %v823_v30 }
  0x62   :  { %v305_v62 = vsub.f32 1.5707964, %v303_v37  ;;  %v408_v3 = vsub.f32 1.0, %v400_v58  ;;  %v352_v31 = vadd.f32 %v646_v59, %v645_v43  ;;  %v410_v48 = vmul.f32 %v405_v16, %v381_v7  ;;  %v1440_v59 = vld [vmem:[#allocation6_spill] sm:$0xff] }
  0x63   :  { %v306_v49 = vsub.f32 1.5707964, %v304_v29  ;;  %v412_v58 = vmul.f32 %v407_v63, %v407_v63  ;;  %vm456_vm0 = vcmp.eq.s32.totalorder %v1265_v54, 1  ;;  %vm458_vm1 = vcmp.eq.s32.totalorder %v1265_v54, 2 }
  0x64   :  { %v307_v10 = vsel %vm273_vm4, %v305_v62, %v303_v37  ;;  %v411_v62 = vmul.f32 %v406_v18, %v382_v61  ;;  %v413_v19 = vmul.f32 %v408_v3, %v408_v3  ;;  %612 = vst [vmem:[%s1408_s2 + $0x18] sm:$0xff] %v352_v31  ;;  %vm460_vm3 = vcmp.eq.s32.totalorder %v1265_v54, 3  ;;  %v800_v37 = vpop.eup %799 }
  0x65   :  { %v308_v8 = vsel %vm274_vm5, %v306_v49, %v304_v29  ;;  %v309_v9 = vmul.f32 %v307_v10, %v307_v10  ;;  %v414_v45 = vmul.f32 %v412_v58, %v410_v48  ;;  %vm461_vm4 = vcmp.eq.s32.totalorder %v1229_v24, 4 }
  0x66   :  { %v310_v35 = vmul.f32 %v308_v8, %v308_v8  ;;  %v415_v50 = vmul.f32 %v413_v19, %v411_v62  ;;  %vm462_vm5 = vcmp.eq.s32.totalorder %v1265_v54, 4  ;;  %vm463_vm8 = vcmp.eq.s32.totalorder %v1229_v24, 5  ;;  %v1441_v62 = vld [vmem:[#allocation3_spill] sm:$0xff]  ;;  %v1442_v19 = vld [vmem:[#allocation4_spill] sm:$0xff] }
  0x67   :  { %v1278_v41 = vmul.f32 0.40528473, %v309_v9  ;;  %vm464_vm9 = vcmp.eq.s32.totalorder %v1265_v54, 5  ;;  %v664_v51 = vsel %vm454_vm15, 1.0, %v823_v30  ;;  %v666_v32 = vsel %vm456_vm0, 1.0, %v823_v30  ;;  %v1439_v9 = vld [vmem:[#allocation5_spill] sm:$0xff] }
  0x68   :  { %v1283_v20 = vmul.f32 0.40528473, %v310_v35  ;;  %v416_v1 = vadd.f32 %v415_v50, %v414_v45  ;;  %v667_v42 = vsel %vm457_vm14, 1.0, %v823_v30  ;;  %v668_v61 = vsel %vm458_vm1, 1.0, %v823_v30 }
  0x69   :  { %v313_v7 = vsub.f32 %v1278_v41, %v1161_v28  ;;  %v669_v23 = vsel %vm459_vm2, 1.0, %v823_v30  ;;  %801 = vpow2.f32 %v1221_v5  ;;  %v1435_v56 = vsub.f32 %v1094_v21, %v1126_v52 }
  0x6a   :  { %v314_v39 = vsub.f32 %v1283_v20, %v1164_v25  ;;  %609 = vst [vmem:[%s1408_s2] sm:$0xff] %v416_v1  ;;  %803 = vpow2.f32 %v1231_v6  ;;  %v1436_v49 = vsub.f32 %v1098_v36, %v1129_v60  ;;  %v549_v16 = vadd.f32 %v1235_v11, %v1217_v14  ;;  %v1443_v1 = vld [vmem:[#allocation7_spill] sm:$0xff] }
  0x6b   :  { %v315_v0 = vadd.f32 1.0, %v313_v7  ;;  %v541_v15 = vmul.f32 1.442695, %v1435_v56  ;;  %805 = vpow2.f32 %v1233_v47  ;;  %v555_v5 = vadd.f32 %v1240_v12, %v1226_v53 }
  0x6c   :  { %v316_v57 = vadd.f32 1.0, %v314_v39  ;;  %v543_v63 = vmul.f32 1.442695, %v1436_v49  ;;  %vm465_vm10 = vcmp.eq.s32.totalorder %v1229_v24, 6  ;;  %v670_v6 = vsel %vm460_vm3, 1.0, %v823_v30 }
  0x6d   :  { %v317_v46 = vadd.f32 1e-07, %v315_v0  ;;  %v1437_v18 = vsub.f32 %v1096_v22, %v1126_v52  ;;  %v1438_v47 = vsub.f32 %v1103_v34, %v1129_v60  ;;  %v550_v14 = vadd.f32 %v1251_v55, %v549_v16 }
  0x6e   :  { %v318_v29 = vadd.f32 1e-07, %v316_v57  ;;  %v556_v53 = vadd.f32 %v1254_v26, %v555_v5  ;;  %v567_v11 = vmul.f32 %v1055_v33, %v663_v38  ;;  %v568_v12 = vmul.f32 %v1057_v40, %v664_v51 }
  0x6f   :  { %v319_v17 = vmul.f32 %v317_v46, %v1135_v2  ;;  %v545_v3 = vmul.f32 1.442695, %v1437_v18  ;;  %v547_v8 = vmul.f32 1.442695, %v1438_v47  ;;  %v569_v43 = vmul.f32 %v1439_v9, %v665_v44  ;;  %v802_v31 = vpop.eup %801 }
  0x70   :  { %v320_v10 = vmul.f32 %v318_v29, %v1143_v13  ;;  %v570_v35 = vmul.f32 %v1440_v59, %v666_v32  ;;  %vm466_vm11 = vcmp.eq.s32.totalorder %v1265_v54, 6  ;;  %v671_v48 = vsel %vm461_vm4, 1.0, %v823_v30  ;;  %v804_v55 = vpop.eup %803 }
  0x71   :  { %807 = vrcp.f32 %v319_v17  ;;  %v672_v26 = vsel %vm462_vm5, 1.0, %v823_v30  ;;  %v551_v33 = vadd.f32 %v800_v37, %v550_v14  ;;  %v557_v40 = vadd.f32 %v802_v31, %v556_v53  ;;  %v806_v44 = vpop.eup %805  ;;  %v1444_v17 = vld [vmem:[#allocation8_spill] sm:$0xff]  ;;  %v1447_v53 = vld [vmem:[#allocation10_spill] sm:$0xff] }
  0x72   :  { %809 = vrcp.f32 %v320_v10  ;;  %v571_v58 = vmul.f32 %v1441_v62, %v667_v42  ;;  %v572_v38 = vmul.f32 %v1442_v19, %v668_v61  ;;  %v673_v7 = vsel %vm463_vm8, 1.0, %v823_v30 }
  0x73   :  { %811 = vpow2.f32 %v541_v15  ;;  %v674_v45 = vsel %vm464_vm9, 1.0, %v823_v30  ;;  %v552_v50 = vadd.f32 %v804_v55, %v551_v33  ;;  %v558_v0 = vadd.f32 %v806_v44, %v557_v40  ;;  %v1445_v15 = vld [vmem:[#allocation9_spill] sm:$0xff] }
  0x74   :  { %813 = vpow2.f32 %v543_v63  ;;  %v573_v57 = vmul.f32 %v1443_v1, %v669_v23  ;;  %v581_v51 = vadd.f32 %v569_v43, %v567_v11  ;;  %v587_v32 = vadd.f32 %v570_v35, %v568_v12  ;;  %v1446_v23 = vld [vmem:[#allocation11_spill] sm:$0xff] }
  0x75   :  { %815 = vpow2.f32 %v545_v3  ;;  %v574_v56 = vmul.f32 %v1444_v17, %v670_v6  ;;  %v575_v49 = vmul.f32 %v1445_v15, %v671_v48  ;;  %v576_v11 = vmul.f32 %v1447_v53, %v672_v26  ;;  %v1448_v6 = vld [vmem:[#allocation12_spill] sm:$0xff] }
  0x76   :  { %817 = vpow2.f32 %v547_v8  ;;  %v582_v5 = vadd.f32 %v581_v51, %v571_v58  ;;  %v588_v18 = vadd.f32 %v587_v32, %v572_v38  ;;  %v577_v26 = vmul.f32 %v1094_v21, %v673_v7 }
  0x77   :  { %v808_v39 = vpop.eup %807  ;;  %v578_v62 = vmul.f32 %v1098_v36, %v674_v45 }
  0x78   :  { %v810_v42 = vpop.eup %809  ;;  %v323_v37 = vmul.f32 %v808_v39, %v1135_v2  ;;  %v327_v61 = vmul.f32 %v808_v39, %v317_v46  ;;  %v583_v43 = vadd.f32 %v582_v5, %v573_v57  ;;  %v589_v31 = vadd.f32 %v588_v18, %v574_v56 }
  0x79   :  { %v812_v63 = vpop.eup %811  ;;  %v324_v10 = vmul.f32 %v810_v42, %v1143_v13  ;;  %v328_v16 = vmul.f32 %v810_v42, %v318_v29  ;;  %v675_v29 = vsel %vm465_vm10, 1.0, %v823_v30 }
  0x7a   :  { %v814_v3 = vpop.eup %813  ;;  %v325_v47 = vmul.f32 %v323_v37, %v1278_v41  ;;  %v329_v8 = vmul.f32 %v327_v61, %v1446_v23  ;;  %v553_v14 = vadd.f32 %v812_v63, %v552_v50  ;;  %v584_v55 = vadd.f32 %v583_v43, %v575_v49 }
  0x7b   :  { %v816_v2 = vpop.eup %815  ;;  %v326_v46 = vmul.f32 %v324_v10, %v1283_v20  ;;  %v330_v12 = vmul.f32 %v328_v16, %v1448_v6  ;;  %v559_v9 = vadd.f32 %v814_v3, %v558_v0  ;;  %v590_v58 = vadd.f32 %v589_v31, %v576_v11 }
  0x7c   :  { %v818_v59 = vpop.eup %817  ;;  %v331_v13 = vmul.f32 %v325_v47, %v1278_v41  ;;  %v554_v35 = vadd.f32 %v816_v2, %v553_v14  ;;  %v676_v41 = vsel %vm466_vm11, 1.0, %v823_v30  ;;  %v585_v44 = vadd.f32 %v584_v55, %v577_v26 }
  0x7d   :  { %v332_v48 = vmul.f32 %v326_v46, %v1283_v20  ;;  %v560_v33 = vadd.f32 %v818_v59, %v559_v9  ;;  %v579_v20 = vmul.f32 %v1096_v22, %v675_v29  ;;  %v580_v7 = vmul.f32 %v1103_v34, %v676_v41 }
  0x7e   :  { %v333_v40 = vadd.f32 %v331_v13, %v329_v8  ;;  %819 = vlog2.f32 %v554_v35  ;;  %v591_v50 = vadd.f32 %v590_v58, %v578_v62 }
  0x7f   :  { %v334_v19 = vadd.f32 %v332_v48, %v330_v12  ;;  %821 = vlog2.f32 %v560_v33 }
  0x80   :  { %v335_v24 = vsub.f32 %v1161_v28, %v333_v40  ;;  %v586_v28 = vadd.f32 %v585_v44, %v579_v20  ;;  %v592_v57 = vadd.f32 %v591_v50, %v580_v7 }
  0x81   :  { %v336_v38 = vsub.f32 %v1164_v25, %v334_v19 }
  0x82   :  { %v339_v21 = vsub.f32 1.0, %v335_v24 }
  0x83   :  { %v340_v39 = vsub.f32 1.0, %v336_v38 }
  0x84   :  { %v820_v36 = vpop.eup %819  ;;  %v341_v45 = vsel %vm65_vm6, %v339_v21, 0.0 }
  0x85   :  { %v822_v0 = vpop.eup %821  ;;  %v342_v54 = vsel %vm66_vm7, %v340_v39, 0.0  ;;  %v562_v30 = vmul.f32 0.6931472, %v820_v36 }
  0x86   :  { %v343_v1 = vadd.f32 %v342_v54, %v341_v45  ;;  %v564_v25 = vmul.f32 0.6931472, %v822_v0 }
  0x87   :  { %v565_v22 = vadd.f32 %v562_v30, %v1126_v52 }
  0x88   :  { %v566_v51 = vadd.f32 %v564_v25, %v1129_v60  ;;  %610 = vst [vmem:[%s1408_s2 + $0x8] sm:$0xff] %v343_v1 }
  0x89   :  { %v595_v34 = vsub.f32 %v565_v22, %v586_v28 }
  0x8a   :  { %v596_v32 = vsub.f32 %v566_v51, %v592_v57 }
  0x8b   :  { %v597_v42 = vsel %vm65_vm6, %v595_v34, 0.0 }
  0x8c   :  { %v598_v37 = vsel %vm66_vm7, %v596_v32, 0.0 }
  0x8d   :  { %v599_v61 = vadd.f32 %v598_v37, %v597_v42 }
  0x8f   :  { %611 = vst [vmem:[%s1408_s2 + $0x10] sm:$0xff] %v599_v61 }

</bundles_post_ra>
